<compile_context>
chip_gen: v7x
topology: tpu7x:2x2x1
jax: 0.10.0
libtpu: 0.0.40
codegen_flags: <defaults>
</compile_context>

<pallas_src>
from functools import partial

import numpy as np
import jax
import jax.numpy as jnp
from jax.experimental import pallas as pl
from jax.experimental.pallas import tpu as pltpu


def _round_up(x, mult):
    return ((x + mult - 1) // mult) * mult


def _choose_tile(padded, tile_max, min_tiles=1):
    """Largest multiple of 128 that divides `padded`, is <= tile_max and yields
    at least `min_tiles` grid steps (padded is already a multiple of 128)."""
    best = 128
    t = 128
    limit = min(tile_max, padded)
    while t <= limit:
        if padded % t == 0 and padded // t >= min_tiles:
            best = t
        t += 128
    return best


# ----------------------------------------------------------------------------
# Precompute glue (mirrors _ele2coe / _fix_inputs / _base of the PyTorch code)
# ----------------------------------------------------------------------------
def _ele2coe(m, d):
    """Index offsets of the (d+1)^m support points of one element.  [S, m]."""
    grids = np.meshgrid(*([np.arange(d + 1)] * m), indexing="ij")
    return np.stack(grids, axis=-1).reshape(-1, m).astype(np.int32)


def _lagrange_base(shift, m, d):
    """Tensor-product Lagrange basis at local coords shift in [0,1]^m. [N, S]."""
    nodes = np.linspace(0.0, 1.0, d + 1)
    Ls = []
    for j in range(d + 1):
        num = jnp.ones_like(shift)
        den = 1.0
        for i in range(d + 1):
            if i == j:
                continue
            num = num * (shift - nodes[i])
            den = den * (nodes[j] - nodes[i])
        Ls.append(num / den)
    L = jnp.stack(Ls, axis=-1)                      # [N, m, d+1]
    base = L[:, 0, :]                               # [N, d+1]
    for k in range(1, m):
        base = (base[:, :, None] * L[:, k, None, :]).reshape(base.shape[0], -1)
    return base                                     # [N, (d+1)^m], row-major


def _fix_inputs(points, m, d, mesh_bound, mesh_size):
    """points [N, m] -> (flat coefficient indices [N, S], local shifts [N, m])."""
    lb = jnp.asarray(mesh_bound[0], dtype=points.dtype)
    ub = jnp.asarray(mesh_bound[1], dtype=points.dtype)
    msz = jnp.asarray(mesh_size, dtype=points.dtype)
    x = (points - lb) / (ub - lb) * msz             # map domain -> [0, mesh_size]
    x = jnp.clip(x, 0.0, msz)
    elem = jnp.clip(jnp.floor(x), 0.0, msz - 1.0)   # element index per dim
    shift = x - elem                                # local coordinate in [0,1]
    elem = elem.astype(jnp.int32)
    e2c = jnp.asarray(_ele2coe(m, d))               # [S, m]
    sup = elem[:, None, :] * d + e2c[None, :, :]    # [N, S, m] coef grid indices
    coe_shape = tuple(int(s) * d + 1 for s in mesh_size)
    strides = jnp.asarray(np.array(pl.strides_from_shape(coe_shape), dtype=np.int32))
    flat = jnp.sum(sup * strides[None, None, :], axis=-1)
    return flat.astype(jnp.int32), shift


# ----------------------------------------------------------------------------
# Pallas kernel: forward() hot path  out = coe @ W_T  (K-chunked MXU GEMV)
# ----------------------------------------------------------------------------
def _matvec_kernel(coe_ref, wt_ref, out_ref, acc_ref):
    # coe_ref: (1, tile_k)       bf16  -- coefficient chunk (single row)
    # wt_ref:  (tile_k, tile_n)  bf16  -- fixed-input weights, transposed layout
    # out_ref: (1, tile_n)       f32   -- lane-dense single-row output block
    # acc_ref: (8, tile_n)       f32   -- VMEM scratch, resident across K axis
    @pl.when(pl.program_id(1) == 0)
    def _():
        acc_ref[...] = jnp.zeros_like(acc_ref)

    lhs = jnp.broadcast_to(coe_ref[...], (8, coe_ref.shape[1]))
    acc_ref[...] += jnp.dot(lhs, wt_ref[...],
                            preferred_element_type=jnp.float32)

    @pl.when(pl.program_id(1) == pl.num_programs(1) - 1)
    def _():
        out_ref[...] = acc_ref[0:1, :]


@partial(jax.jit, static_argnames=("n", "tile_n", "tile_k"))
def lagrange_matvec(coe_flat, w_t_pad, *, n, tile_n, tile_k):
    kpad, npad = w_t_pad.shape
    k = coe_flat.shape[0]
    # only per-call prep: pad the (learnable) coefficient vector into one row
    coe_row = jnp.zeros((1, kpad), jnp.bfloat16).at[0, :k].set(
        coe_flat.astype(jnp.bfloat16))

    grid = (npad // tile_n, kpad // tile_k)          # reduction (K) axis last
    out = pl.pallas_call(
        _matvec_kernel,
        out_shape=jax.ShapeDtypeStruct((1, npad), jnp.float32),
        grid=grid,
        in_specs=[
            pl.BlockSpec((1, tile_k), lambda i, kk: (0, kk)),
            pl.BlockSpec((tile_k, tile_n), lambda i, kk: (kk, i)),
        ],
        out_specs=pl.BlockSpec((1, tile_n), lambda i, kk: (0, i)),
        scratch_shapes=[pltpu.VMEM((8, tile_n), jnp.float32)],
        compiler_params=pltpu.CompilerParams(
            dimension_semantics=("parallel", "arbitrary"),
            vmem_limit_bytes=32 * 1024 * 1024),
        cost_estimate=pl.CostEstimate(
            flops=2 * 8 * npad * kpad,
            transcendentals=0,
            bytes_accessed=npad * kpad * 2 + kpad * 2 + npad * 4),
    )(coe_row, w_t_pad)
    return out[0, :n]


# ----------------------------------------------------------------------------
# Module wrapper (mirrors LagrangeInterpFixInputs)
# ----------------------------------------------------------------------------
class LagrangeInterpFixInputs:
    def __init__(self, inputs, interp_dim, interp_degree, mesh_bound, mesh_size,
                 key, tile_n=1024, tile_k=1024):
        self.m = int(interp_dim)
        self.d = int(interp_degree)
        self.mesh_bound = np.array(mesh_bound, dtype=np.float64).reshape(2, self.m)
        self.mesh_size = np.array(mesh_size, dtype=np.int64).reshape(self.m)
        self.tile_n_max = max(128, _round_up(int(tile_n), 128))
        self.tile_k_max = max(128, _round_up(int(tile_k), 128))
        coe_shape = tuple(int(s) * self.d + 1 for s in self.mesh_size)
        # deterministic synthetic parameter (PyTorch: .normal_())
        self.interp_coe = jax.random.normal(key, coe_shape, dtype=jnp.float32)
        self.update_inputs(inputs)

    def update_inputs(self, inputs):
        inputs = jnp.asarray(inputs, jnp.float32)
        if self.m == 1 and inputs.shape[-1] != 1:
            inputs = inputs[..., None]
        self.inputs_size = inputs.shape
        pts = inputs.reshape(-1, self.m)
        self._inputs = pts
        self.flat_indices, self.points_shift = _fix_inputs(
            pts, self.m, self.d, self.mesh_bound, self.mesh_size)
        self.base = _lagrange_base(self.points_shift, self.m, self.d).astype(jnp.float32)

        # --- one-time precompute of the dense fixed-input weight matrix ------
        # Built directly in transposed (kpad, npad) layout, cast to bf16 once.
        N = pts.shape[0]
        K = int(np.prod([int(s) * self.d + 1 for s in self.mesh_size]))
        kpad = _round_up(K, 128)                   # no extra K padding waste
        npad = _round_up(N, 128)                   # no extra N padding waste
        tile_k = _choose_tile(kpad, self.tile_k_max, min_tiles=1)
        # >= 2 N tiles when possible so both v7x TensorCores split the stream
        tile_n = _choose_tile(npad, self.tile_n_max,
                              min_tiles=2 if npad >= 256 else 1)

        w_t = jnp.zeros((kpad, npad), jnp.float32)
        w_t = w_t.at[self.flat_indices.T, jnp.arange(N)[None, :]].add(self.base.T)
        self.w_t_pad = jax.block_until_ready(w_t.astype(jnp.bfloat16))
        self.n_points = N
        self.tile_n = tile_n
        self.tile_k = tile_k

    def forward(self):
        coe_flat = self.interp_coe.reshape(-1)
        out = lagrange_matvec(coe_flat, self.w_t_pad, n=self.n_points,
                              tile_n=self.tile_n, tile_k=self.tile_k)
        return out.reshape(self.inputs_size[:-1])


# ----------------------------------------------------------------------------
if __name__ == "__main__":
    key = jax.random.PRNGKey(0)
    k_coe, k_in = jax.random.split(key)

    # small config: m=2 spatial dims, degree-2 piecewise Lagrange on an 8x8 mesh
    m, d = 2, 2
    mesh_bound = [[0.0, 0.0], [1.0, 1.0]]
    mesh_size = [8, 8]
    inputs = jax.random.uniform(k_in, (16, 32, m), jnp.float32,
                                minval=0.02, maxval=0.98)      # N = 512 points

    # small tile caps in the demo so both grid axes (N tiles, K chunks) exercise
    mod = LagrangeInterpFixInputs(inputs, m, d, mesh_bound, mesh_size, k_coe,
                                  tile_n=256, tile_k=128)
    out = jax.block_until_ready(mod.forward())
    assert out.shape == inputs.shape[:-1]

    coe_flat = mod.interp_coe.reshape(-1)

    # (1) exact check of the GEMV kernel against the same bf16 weights
    kpad = mod.w_t_pad.shape[0]
    coe_row = jnp.zeros((kpad,), jnp.float32).at[:coe_flat.shape[0]].set(
        coe_flat.astype(jnp.bfloat16).astype(jnp.float32))
    ref_exact = jnp.sum(coe_row[:, None] * mod.w_t_pad.astype(jnp.float32),
                        axis=0)[:mod.n_points].reshape(inputs.shape[:-1])
    np.testing.assert_allclose(np.asarray(out), np.asarray(ref_exact),
                               rtol=1e-4, atol=1e-4)

    # (2) semantic check against the full-precision gather formulation
    #     (looser tolerance because W / coe are streamed in bf16)
    ref = jnp.sum(jnp.take(coe_flat, mod.flat_indices) * mod.base,
                  axis=1).reshape(inputs.shape[:-1])
    np.testing.assert_allclose(np.asarray(out), np.asarray(ref),
                               rtol=5e-2, atol=5e-2)
    print("KERNEL_OK")
</pallas_src>

<mosaic_0001>
module attributes {stable_mosaic.version = 11 : i64} {
  func.func @_matvec_kernel(%arg0: i32, %arg1: i32, %arg2: memref<1x128xbf16, #tpu.memory_space<vmem>>, %arg3: memref<128x256xbf16, #tpu.memory_space<vmem>>, %arg4: memref<1x256xf32, #tpu.memory_space<vmem>>, %arg5: memref<8x256xf32, #tpu.memory_space<vmem>>) attributes {dimension_semantics = [#tpu.dimension_semantics<parallel>, #tpu.dimension_semantics<arbitrary>], iteration_bounds = array<i64: 2, 3>, scalar_prefetch = 0 : i64, scratch_operands = 1 : i64, tpu.core_type = #tpu.core_type<tc>, window_params = [{transform_indices = @transform_0, window_bounds = array<i64: 1, 128>}, {transform_indices = @transform_1, window_bounds = array<i64: 128, 256>}, {transform_indices = @transform_2, window_bounds = array<i64: 1, 256>}]} {
    %c0_i32 = arith.constant 0 : i32
    %0 = arith.cmpi eq, %arg1, %c0_i32 : i32
    %1 = arith.extui %0 : i1 to i32
    %c0_i32_0 = arith.constant 0 : i32
    %2 = arith.cmpi ne, %1, %c0_i32_0 : i32
    scf.if %2 {
      %cst_9 = arith.constant 0.000000e+00 : f32
      %14 = vector.broadcast %cst_9 : f32 to vector<8x256xf32>
      %c0_10 = arith.constant 0 : index
      %c0_11 = arith.constant 0 : index
      %15 = vector.load %arg5[%c0_10, %c0_11] : memref<8x256xf32, #tpu.memory_space<vmem>>, vector<8x256xf32>
      tpu.vector_store %arg5[%c0_10, %c0_11], %14 {strides = array<i32>} : memref<8x256xf32, #tpu.memory_space<vmem>>, vector<8x256xf32>,
    } else {
    }
    %c0 = arith.constant 0 : index
    %c0_1 = arith.constant 0 : index
    %3 = vector.load %arg2[%c0, %c0_1] : memref<1x128xbf16, #tpu.memory_space<vmem>>, vector<1x128xbf16>
    %4 = vector.shape_cast %3 : vector<1x128xbf16> to vector<1x128xbf16>
    %5 = vector.broadcast %4 : vector<1x128xbf16> to vector<8x128xbf16>
    %c0_2 = arith.constant 0 : index
    %c0_3 = arith.constant 0 : index
    %6 = vector.load %arg5[%c0_2, %c0_3] : memref<8x256xf32, #tpu.memory_space<vmem>>, vector<8x256xf32>
    %c0_4 = arith.constant 0 : index
    %c0_5 = arith.constant 0 : index
    %7 = vector.load %arg3[%c0_4, %c0_5] : memref<128x256xbf16, #tpu.memory_space<vmem>>, vector<128x256xbf16>
    %cst = arith.constant dense<0.000000e+00> : vector<8x256xf32>
    %8 = tpu.matmul %5, %7, %cst {dimension_numbers = #tpu.dot_dimension_numbers<[1], [0], [0], [1], [0, 0, 1, 1], [], []>} : vector<8x128xbf16>, vector<128x256xbf16>, vector<8x256xf32> -> vector<8x256xf32>
    %9 = arith.addf %6, %8 : vector<8x256xf32>
    %c0_6 = arith.constant 0 : index
    %c0_7 = arith.constant 0 : index
    %10 = vector.load %arg5[%c0_6, %c0_7] : memref<8x256xf32, #tpu.memory_space<vmem>>, vector<8x256xf32>
    tpu.vector_store %arg5[%c0_6, %c0_7], %9 {strides = array<i32>} : memref<8x256xf32, #tpu.memory_space<vmem>>, vector<8x256xf32>,
    %c2_i32 = arith.constant 2 : i32
    %11 = arith.cmpi eq, %arg1, %c2_i32 : i32
    %12 = arith.extui %11 : i1 to i32
    %c0_i32_8 = arith.constant 0 : i32
    %13 = arith.cmpi ne, %12, %c0_i32_8 : i32
    scf.if %13 {
      %c0_9 = arith.constant 0 : index
      %c0_10 = arith.constant 0 : index
      %14 = vector.load %arg5[%c0_9, %c0_10] : memref<8x256xf32, #tpu.memory_space<vmem>>, vector<1x256xf32>
      %c0_11 = arith.constant 0 : index
      %c0_12 = arith.constant 0 : index
      %15 = vector.load %arg4[%c0_11, %c0_12] : memref<1x256xf32, #tpu.memory_space<vmem>>, vector<1x256xf32>
      tpu.vector_store %arg4[%c0_11, %c0_12], %14 {strides = array<i32>} : memref<1x256xf32, #tpu.memory_space<vmem>>, vector<1x256xf32>,
    } else {
    }
    return
  }
  func.func @transform_0(%arg0: i32, %arg1: i32) -> (i32, i32) {
    %c0_i32 = arith.constant 0 : i32
    %c0_i32_0 = arith.constant 0 : i32
    return %c0_i32, %arg1 : i32, i32
  }
  func.func @transform_1(%arg0: i32, %arg1: i32) -> (i32, i32) {
    %c0_i32 = arith.constant 0 : i32
    return %arg1, %arg0 : i32, i32
  }
  func.func @transform_2(%arg0: i32, %arg1: i32) -> (i32, i32) {
    %c0_i32 = arith.constant 0 : i32
    %c0_i32_0 = arith.constant 0 : i32
    return %c0_i32, %arg0 : i32, i32
  }
}

</mosaic_0001>

<bundles_post_ra>
// kernel: lagrange_matvec.1
= control target key start
LH: loop header
LB: loop body
LE: loop exit
PB: predicated region body
PF: predicated region fallthrough
CT: control target
= control target key end

     0   :  { %7 = vsyncpa [#allocation4], 0  ;;  %s1073_s0 = inlined_call_operand.vmem [shape: bf16[1,384], index: 0, kind: input, shape index: {}]   ;;  %s1074_s1 = inlined_call_operand.hbm [shape: bf16[384,512], index: 1, kind: input, shape index: {}]   ;;  %s1075_s2 = inlined_call_operand.hbm [shape: f32[1,512], index: 2, kind: output, shape index: {}]  }
   0x1   :  { %9 = vsyncpa [#allocation4 + $0x1], 0 }
   0x2   :  { %10 = vsyncpa [#allocation5], 0 }
   0x3   :  { %12 = vsyncpa [#allocation5 + $0x1], 0  ;;  %s816_s9 = smov 0   ;;  %s818_s10 = smov 0  }
   0x4   :  { %s820_s11 = smov 0   ;;  %s822_s12 = smov 0  }
   0x5   :  { %s824_s13 = smov 0   ;;  %s826_s14 = smov 0  }
   0x6   :  { %s828_s15 = smov 0   ;;  %s830_s16 = smov 0  }
   0x7   :  { %s832_s17 = smov 0   ;;  %s834_s18 = smov 0  }
   0x8   :  { %s836_s19 = smov 0  }
   0x9 LB: > { %s472_s20 = sadd.s32 4294967295, %s792_s19   ;;  %s473_s21 = sadd.s32 4294967294, %s792_s19   ;;  %s792_s19 = sphi %s836_s19, %s18_s19   ;;  %s788_s18 = sphi %s834_s18, %s1100_s18   ;;  %s784_s17 = sphi %s832_s17, %s1099_s17   ;;  %s780_s16 = sphi %s830_s16, %s1098_s16   ;;  %s776_s15 = sphi %s828_s15, %s1097_s15   ;;  %s772_s14 = sphi %s826_s14, %s1096_s14   ;;  %s768_s13 = sphi %s824_s13, %s1095_s13   ;;  %s764_s12 = sphi %s822_s12, %s1094_s12   ;;  %s760_s11 = sphi %s820_s11, %s1093_s11   ;;  %s756_s10 = sphi %s818_s10, %s1092_s10   ;;  %s752_s9 = sphi %s816_s9, %s1091_s9  }
   0xa   : > { %s27_s22 = sadd.s32 1, %s784_s17  ;;  %s30_s23 = sadd.s32 1, %s788_s18 }
   0xb   : > { %p28_p0 = scmp.ge.s32.totalorder %s27_s22, 3  ;;  %s65_s24 = sadd.s32 1, %s772_s14 }
   0xc   : > { %p72_p1 = scmp.ne.s32.totalorder %s772_s14, %s768_s13  ;;  %p73_p2 = scmp.eq.s32.totalorder %s792_s19, 0 }
   0xd   : > { %s1102_s22 = smov (%p28_p0, %s27_s22), 0  ;;  %s1104_s23 = smov (!%p28_p0, %s30_s23), %s788_s18 }
   0xe   : > { %1079 = sst [smem:[#allocation9_spill]] %s1102_s22  ;;  %s60_s25 = ssub.s32 %s784_s17, %s1102_s22 }
   0xf   : > { %p882_p3 = por %p73_p2, %p72_p1  ;;  %p32_p4 = scmp.ge.s32.totalorder %s1104_s23, 2 }
  0x10   : > { %p78_p5 = scmp.ne.s32.totalorder %s768_s13, %s764_s12  ;;  %p79_p6 = scmp.eq.s32.totalorder %s472_s20, 0 }
  0x11   : > { %s91_s27 = sadd.s32 1, %s760_s11  ;;  %s1106_s23 = smov (%p32_p4, %s1104_s23), 0 }
  0x12   : > { %1081 = sst [smem:[#allocation10_spill]] %s1106_s23  ;;  %p890_p7 = por %p79_p6, %p78_p5 }
  0x13   : > { %p101_p8 = scmp.ne.s32.totalorder %s760_s11, %s756_s10  ;;  %s61_s29 = ssub.s32 %s788_s18, %s1106_s23 }
  0x14   : > { %p102_p9 = scmp.eq.s32.totalorder %s472_s20, 5  ;;  %s62_s30 = sor.u32 %s61_s29, %s60_s25 }
  0x15   : > { %p89_p10 = scmp.eq.s32.totalorder %s61_s29, 0  ;;  %p63_p11 = scmp.eq.s32.totalorder %s62_s30, 0 }
  0x16   : > { %p898_p12 = por %p102_p9, %p101_p8  ;;  %p107_p13 = scmp.ne.s32.totalorder %s756_s10, %s752_s9 }
  0x17   : > { %s903_s4 = scalar_select %p89_p10, %s760_s11, %s91_s27  }
  0x18   : > { %s1083_s3 = scalar_select %p898_p12, 1, 0 }
  0x19   : > { %s906_s5 = scalar_select %p63_p11, %s772_s14, %s65_s24  }
  0x1a   : > { %p108_p0 = scmp.eq.s32.totalorder %s473_s21, 5  ;;  %p521_p1 = scmp.lt.s32.totalorder %s792_s19, 6 }
  0x1b   : > { %s134_s7 = sand.u32 1, %s772_s14   ;;  %s478_s12 = sshll.u32 %s788_s18, 1 }
  0x1c   : > { %p911_p2 = por %p108_p0, %p107_p13  ;;  %s476_s8 = sshll.u32 %s134_s7, 7 }
  0x1d   : > { %s507_s20 = sshll.u32 %s784_s17, 6  ;;  %s138_s25 = scalar_lea.vmem [#allocation3], %s476_s8 }
  0x1e   : > { %s1084_s6 = scalar_select %p911_p2, 1, 0 }
  0x1f   : > { %s148_s29 = sshll.u32 %s138_s25, 4  ;;  %s145_s30 = sadd.s32 %s507_s20, %s478_s12  ;;  %s918_s29 = int_to_ptr.vmem [resolvable:$true] %s148_s29 }
  0x20   : > { %s480_s27 = sshll.u32 %s145_s30, 6  ;;  %p922_p4 = pnand %p521_p1, %p882_p3 }
  0x21   : > { %s929_s22 = scalar_lea.hbm %s1074_s1, %s480_s27  ;;  %s932_s8 = scalar_lea.sflag [#allocation4], %s134_s7 }
  0x22   : > { %s640_s12 = scalar_lea.hbm %s929_s22, 2048  ;;  %p642_p3 = pneg %p922_p4 }
  0x23   : > { %p641_p6 = scmp.ne.s32.totalorder %s929_s22, %s640_s12  ;;  %s645_s20 = scalar_lea.hbm %s1074_s1, 12288 }
  0x24   : > { %p646_p10 = scmp.lt.u32.totalorder %s929_s22, %s1074_s1  ;;  %p647_p11 = scmp.lt.u32.totalorder %s645_s20, %s640_s12 }
  0x25   : > { %p643_p8 = pnand %p642_p3, %p641_p6  ;;  %p649_p0 = scmp.lt.u32.totalorder %s640_s12, %s929_s22 }
  0x26   : > { %p648_p13 = por %p647_p11, %p646_p10 }
  0x27   : > { %p644_p9 = pneg %p643_p8 }
  0x28   : > { %p650_p1 = por %p649_p0, %p648_p13 }
  0x2a   : > { %p651_p5 = pnand %p650_p1, %p644_p9 }
  0x2c   : > { %654 = shalt.err (!%p651_p5)
}
  0x2d   : > { %s655_s7 = scalar_lea.vmem %s918_s29, 2048  ;;  %s794_s27 = smov [#allocation3]  }
  0x2e   : > { %p656_p6 = scmp.ne.s32.totalorder %s918_s29, %s655_s7  ;;  %s660_s21 = sshll.u32 %s794_s27, 4  ;;  %s661_s21 = int_to_ptr.vmem [resolvable:$false] %s660_s21 }
  0x2f   : > { %s662_s23 = scalar_lea.vmem %s661_s21, 4096  ;;  %p663_p12 = scmp.lt.s32.totalorder %s918_s29, %s661_s21 }
  0x30   : > { %p658_p8 = pnand %p656_p6, %p642_p3  ;;  %p664_p10 = scmp.lt.s32.totalorder %s662_s23, %s655_s7 }
  0x32   : > { %p659_p2 = pneg %p658_p8  ;;  %p665_p11 = por %p664_p10, %p663_p12 }
  0x34   : > { %p666_p13 = pnand %p665_p11, %p659_p2 }
  0x36   : > { %669 = shalt.err (!%p666_p13)
}
  0x37   : > { %s795_s12 = smov 256   ;;  %s796_s26 = smov 128  }
  0x38   : > { %s797_s20 = smov 8   ;;  %p156_p5 = scmp.lt.s32.totalorder %s792_s19, 7 }
  0x39   : > { %516 = dma.hbm_to_vmem [thread:$0]  (!%p922_p4), %s929_s22, 2048, %s918_s29, %s932_s8, %s795_s12, %s796_s26, %s797_s20  }
  0x3a   : > { %p1086_p3 = scmp.ge.s32.totalorder %s792_s19, 1 }
  0x3c   : > { %p157_p9 = pnand %p1086_p3, %p156_p5 }
  0x3d   : > { %s162_s25 = sand.u32 (!%p157_p9), 1, %s768_s13  }
  0x3e   : > { %160 = sbr.rel (%p157_p9) target bundleno = 362 (0x16a), region = 28  ;;  %s482_s30 = sshll.u32 (!%p157_p9), %s162_s25, 7 }
  0x3f   : > { %s163_s7 = scalar_lea.sflag (!%p157_p9), [#allocation4], %s162_s25  ;;  %s964_s27 = scalar_lea.vmem (!%p157_p9), [#allocation3], %s482_s30 }
  0x45   : > { %743 = dma.done.wait (%p890_p7), %s163_s7, 2048  }
  0x46   : > { %745 = vsyncadd (%p890_p7), %s163_s7, 4294965248  ;;  %s187_s22 = sand.u32 1, %s756_s10   ;;  %p190_p12 = scmp.lt.s32.totalorder %s776_s15, 2 }
  0x47   : > { %s974_s29 = sshll.u32 %s187_s22, 1  ;;  %p484_p7 = scmp.ne.s32.totalorder %s776_s15, 0 }
  0x48   : > { %s977_s24 = scalar_select %p190_p12, %s776_s15, 2 }
  0x49   : > { %s189_s12 = scalar_lea.vmem [#allocation6], %s974_s29  ;;  %200 = sbr.rel (%p484_p7) target bundleno = 80 (0x50), region = 36  ;;  %v798_v0 = vmov (!%p484_p7), 0.0  }
  0x4a   : > { %s192_s23 = scalar_lea.vmem %s1073_s0, %s977_s24  ;;  %201 = vst [vmem:[#allocation2] sm:$0xff] (!%p484_p7), %v798_v0  ;;  %202 = vst [vmem:[#allocation2 + $0x8] sm:$0xff] (!%p484_p7), %v798_v0 }
  0x50 PF: > { %v616_v1 = vld [vmem:[%s964_s27 + $0x4] ss:$8 sps:$4 sm:$0xff]   ;;  %v618_v2 = vld [vmem:[%s964_s27] ss:$8 sps:$4 sm:$0xff]   ;;  %v799_v3 = vmov 0   ;;  %v207_v13 = vlaneseq  ;;  %p501_p2 = scmp.ne.s32.totalorder %s776_s15, 2 }
  0x51   : > { %341 = vmatprep.mubr.bf16.mxu0 %v799_v3  ;;  %309 = vmatprep.subr.bf16.mxu0 %v616_v1  ;;  %v619_v4 = vld [vmem:[%s964_s27 + $0x14] ss:$8 sps:$4 sm:$0xff]   ;;  %v621_v5 = vld [vmem:[%s964_s27 + $0x10] ss:$8 sps:$4 sm:$0xff]   ;;  %v622_v6 = vld [vmem:[%s964_s27 + $0x24] ss:$8 sps:$4 sm:$0xff]  }
  0x52   : > { %310 = vmatpush1.bf16.msra.mxu0 %v618_v2  ;;  %v624_v7 = vld [vmem:[%s964_s27 + $0x20] ss:$8 sps:$4 sm:$0xff]   ;;  %v625_v8 = vld [vmem:[%s964_s27 + $0x34] ss:$8 sps:$4 sm:$0xff]   ;;  %v627_v9 = vld [vmem:[%s964_s27 + $0x30] ss:$8 sps:$4 sm:$0xff]  }
  0x53   : > { %311 = vmatprep.subr.bf16.mxu0 %v619_v4  ;;  %v628_v10 = vld [vmem:[%s964_s27 + $0x44] ss:$8 sps:$4 sm:$0xff]   ;;  %v630_v11 = vld [vmem:[%s964_s27 + $0x40] ss:$8 sps:$4 sm:$0xff]   ;;  %v631_v12 = vld [vmem:[%s964_s27 + $0x54] ss:$8 sps:$4 sm:$0xff]  }
  0x54   : > { %v633_v14 = vld [vmem:[%s964_s27 + $0x50] ss:$8 sps:$4 sm:$0xff]   ;;  %v634_v15 = vld [vmem:[%s964_s27 + $0x64] ss:$8 sps:$4 sm:$0xff]   ;;  %v208_v16 = vshrl.u32 %v207_v13, 7  ;;  %vm361_vm0 = vcmp.lt.s32.totalorder (!%p501_p2), %v207_v13, 256 }
  0x55   : > { %v636_v17 = vld [vmem:[%s964_s27 + $0x60] ss:$8 sps:$4 sm:$0xff]   ;;  %v203_v18 = vld [vmem:[%s192_s23] sm:$0x1]  ;;  %v637_v19 = vld [vmem:[%s964_s27 + $0x74] ss:$8 sps:$4 sm:$0xff]  }
  0x56   : > { %312 = vmatpush1.bf16.msra.mxu0 %v621_v5  ;;  %v205_v20 = vpack.i.b16 %v203_v18, %v203_v18  ;;  %v209_v21 = vsub.s32 0, %v208_v16  ;;  %v639_v22 = vld [vmem:[%s964_s27 + $0x70] ss:$8 sps:$4 sm:$0xff]  }
  0x57   : > { %313 = vmatprep.subr.bf16.mxu0 %v622_v6  ;;  %v211_v24 = vld [vmem:[#allocation2] sm:$0xff]  ;;  %v212_v25 = vld [vmem:[#allocation2 + $0x8] sm:$0xff] }
  0x58   : > { %v210_v23 = vrot.slane %v205_v20, %v209_v21 }
  0x5a   : > { %314 = vmatpush1.bf16.msra.mxu0 %v624_v7 }
  0x5b   : > { %315 = vmatprep.subr.bf16.mxu0 %v625_v8 }
  0x5e   : > { %316 = vmatpush1.bf16.msra.mxu0 %v627_v9 }
  0x5f   : > { %317 = vmatprep.subr.bf16.mxu0 %v628_v10 }
  0x62   : > { %318 = vmatpush1.bf16.msra.mxu0 %v630_v11 }
  0x63   : > { %319 = vmatprep.subr.bf16.mxu0 %v631_v12 }
  0x66   : > { %320 = vmatpush1.bf16.msra.mxu0 %v633_v14 }
  0x67   : > { %321 = vmatprep.subr.bf16.mxu0 %v634_v15 }
  0x6a   : > { %322 = vmatpush1.bf16.msra.mxu0 %v636_v17 }
  0x6b   : > { %323 = vmatprep.subr.bf16.mxu0 %v637_v19 }
  0x6e   : > { %324 = vmatpush1.bf16.msra.mxu0 %v639_v22 }
  0x71   : > { %342 = vmatmul.mubr.bf16.vlgmr.msra.gmra.mrb[0].mxu0 %v210_v23 }
 0x142   : > { %357 = sbr.rel (%p501_p2) target bundleno = 337 (0x151), region = 40 }
 0x144   : > { %v343_v26 = vpop.f32.mrb[0].mxu0 }
 0x145   : > { %v350_v27 = vadd.f32 %v343_v26, %v211_v24  ;;  %v345_v28 = vpop.f32.mrb[1].mxu0 }
 0x146   : > { %v351_v29 = vadd.f32 %v345_v28, %v212_v25  ;;  %v347_v30 = vpop.f32.mrb[2].mxu0 }
 0x147   : > { %352 = vst [vmem:[#allocation2] sm:$0xff] %v350_v27  ;;  %v348_v31 = vpop.f32.mrb[3].mxu0 }
 0x148   : > { %353 = vst [vmem:[#allocation2 + $0x8] sm:$0xff] %v351_v29 }
 0x14f   : > { %v358_v32 = vld [vmem:[#allocation2] ss:$8 sm:$0x3] }
 0x150   : > { %363 = vst.msk [vmem:[%s189_s12] sm:$0x3] %vm361_vm0, %v358_v32 }
 0x151 PF: > { %s508_s20 = sshll.u32 %s780_s16, 5  ;;  %s379_s27 = sshll.u32 %s189_s12, 4  ;;  %s380_s27 = int_to_ptr.vmem [resolvable:$true] %s379_s27 }
 0x152   : > { %s1013_s7 = scalar_lea.hbm %s1075_s2, %s508_s20  ;;  %s365_s15 = scalar_lea.sflag [#allocation5], %s187_s22 }
 0x153   : > { %s670_s24 = scalar_lea.vmem %s380_s27, 32  ;;  %p1087_p0 = scmp.ne.s32.totalorder %s1083_s3, 0 }
 0x154   : > { %p671_p4 = scmp.ne.s32.totalorder %s380_s27, %s670_s24  ;;  %s800_s8 = smov [#allocation6]  }
 0x155   : > { %s674_s21 = sshll.u32 %s800_s8, 4  ;;  %s675_s21 = int_to_ptr.vmem [resolvable:$false] %s674_s21 }
 0x156   : > { %p672_p1 = pnand %p671_p4, %p1087_p0  ;;  %s676_s23 = scalar_lea.vmem %s675_s21, 64 }
 0x157   : > { %p677_p8 = scmp.lt.s32.totalorder %s380_s27, %s675_s21  ;;  %p678_p10 = scmp.lt.s32.totalorder %s676_s23, %s670_s24 }
 0x158   : > { %p673_p6 = pneg %p672_p1 }
 0x159   : > { %p679_p11 = por %p678_p10, %p677_p8 }
 0x15b   : > { %p680_p13 = pnand %p679_p11, %p673_p6 }
 0x15d   : > { %683 = shalt.err (!%p680_p13)
}
 0x15e   : > { %s684_s16 = scalar_lea.hbm %s1013_s7, 32  ;;  %s688_s12 = scalar_lea.hbm %s1075_s2, 64 }
 0x15f   : > { %p685_p5 = scmp.ne.s32.totalorder %s1013_s7, %s684_s16  ;;  %p689_p12 = scmp.lt.u32.totalorder %s1013_s7, %s1075_s2 }
 0x160   : > { %p690_p7 = scmp.lt.u32.totalorder %s688_s12, %s684_s16  ;;  %p692_p4 = scmp.lt.u32.totalorder %s684_s16, %s1013_s7 }
 0x161   : > { %p686_p3 = pnand %p685_p5, %p1087_p0 }
 0x162   : > { %p691_p2 = por %p690_p7, %p689_p12 }
 0x163   : > { %p687_p9 = pneg %p686_p3 }
 0x164   : > { %p693_p1 = por %p692_p4, %p691_p2 }
 0x166   : > { %p694_p6 = pnand %p693_p1, %p687_p9 }
 0x168   : > { %697 = shalt.err (!%p694_p6)
}
 0x169   : > { %511 = dma.vmem_to_hbm [thread:$0]  (%p1087_p0), %s380_s27, 32, %s1013_s7, %s365_s15  }
 0x16a PF: > { %p522_p8 = scmp.ge.s32.totalorder %s792_s19, 2  ;;  %s391_s20 = sand.u32 1, %s752_s9  }
 0x16b   : > { %p1088_p10 = scmp.ne.s32.totalorder %s1084_s6, 0  ;;  %s392_s25 = scalar_lea.sflag [#allocation5], %s391_s20 }
 0x16d   : > { %p518_p11 = pnand %p522_p8, %p1088_p10 }
 0x16f   : > { %747 = dma.done.wait (!%p518_p11), %s392_s25, 32  }
 0x170   : > { %749 = vsyncadd (!%p518_p11), %s392_s25, 4294967264  ;;  %s18_s19 = sadd.s32 1, %s792_s19   ;;  %s1089_s3 = sld [smem:[#allocation9_spill]] }
 0x171   : > { %p15_p13 = scmp.ge.s32.totalorder %s18_s19, 8   ;;  %s1090_s30 = sld [smem:[#allocation10_spill]] }
 0x172   : > { %s1091_s9 = smov %s756_s10  ;;  %s1092_s10 = smov %s760_s11 }
 0x173   : > { %s1093_s11 = smov %s903_s4  ;;  %s1094_s12 = smov %s768_s13 }
 0x174   : > { %s1095_s13 = smov %s772_s14  ;;  %s1096_s14 = smov %s906_s5 }
 0x175   : > { %s1097_s15 = smov %s784_s17  ;;  %s1098_s16 = smov %s788_s18 }
 0x176   : > { %s1099_s17 = smov %s1089_s3  ;;  %17 = sbr.rel (!%p15_p13) target bundleno = 9 (0x9), region = 84 }
 0x177   : > { %s1100_s18 = smov %s1090_s30 }
 0x17d   :  { %397 = vsyncpa [#allocation4], 1 }
 0x17e   :  { %399 = vsyncpa [#allocation4 + $0x1], 1 }
 0x17f   :  { %400 = vsyncpa [#allocation5], 1 }
 0x180   :  { %402 = vsyncpa [#allocation5 + $0x1], 1 }

</bundles_post_ra>
